<compile_context>
chip_gen: v7x
topology: tpu7x:2x2x1
jax: 0.10.0
libtpu: 0.0.40
codegen_flags: <defaults>
</compile_context>

<pallas_src>
import math

import jax
import jax.numpy as jnp
from jax.experimental import pallas as pl
from jax.experimental.pallas import tpu as pltpu


# ----------------------------------------------------------------------------
# helpers
# ----------------------------------------------------------------------------
def _gelu_exact(x):
    # PyTorch nn.GELU() default (approximate='none'): 0.5*x*(1+erf(x/sqrt(2)))
    return 0.5 * x * (1.0 + jax.lax.erf(x * (1.0 / math.sqrt(2.0))))


def _w3x3_to_mat(w):
    # PyTorch conv weight (Cout, Cin, 3, 3) -> (9*Cin, Cout),
    # row index = (ky*3 + kx)*Cin + cin  (matches in-kernel tap concat order)
    c_out, c_in = w.shape[0], w.shape[1]
    return jnp.transpose(w, (2, 3, 1, 0)).reshape(9 * c_in, c_out)


# ----------------------------------------------------------------------------
# 2x2 avg / max pool (stride 2)
# ----------------------------------------------------------------------------
def _pool2_kernel_avg(x_ref, o_ref):
    c = o_ref.shape[-1]
    x = x_ref[0]                               # (Hh, 2, Wh, 2*C)
    y = x[:, 0] + x[:, 1]                      # sum over row pair -> (Hh, Wh, 2*C)
    o_ref[0] = ((y[:, :, :c] + y[:, :, c:]) * 0.25).astype(o_ref.dtype)


def _pool2_kernel_max(x_ref, o_ref):
    c = o_ref.shape[-1]
    x = x_ref[0]
    y = jnp.maximum(x[:, 0], x[:, 1])
    o_ref[0] = jnp.maximum(y[:, :, :c], y[:, :, c:]).astype(o_ref.dtype)


def pool2(x_nhwc, avg=True):
    b, h, w, c = x_nhwc.shape
    hh, wh = h // 2, w // 2
    # glue (free XLA reshape): fold the 2x2 windows so the kernel only needs
    # static slices/adds.
    xr = x_nhwc.reshape(b, hh, 2, wh, 2 * c)
    kernel = _pool2_kernel_avg if avg else _pool2_kernel_max
    return pl.pallas_call(
        kernel,
        out_shape=jax.ShapeDtypeStruct((b, hh, wh, c), x_nhwc.dtype),
        grid=(b,),
        in_specs=[pl.BlockSpec((1, hh, 2, wh, 2 * c), lambda i: (i, 0, 0, 0, 0))],
        out_specs=pl.BlockSpec((1, hh, wh, c), lambda i: (i, 0, 0, 0)),
        compiler_params=pltpu.CompilerParams(dimension_semantics=("parallel",)),
    )(xr)


# ----------------------------------------------------------------------------
# fused 3x3 conv + bias + GroupNorm + exact GELU (+ fused residual epilogue)
# ----------------------------------------------------------------------------
def _make_conv_kernel(hh, ww, use_norm, eps, res_mode, matmul_dtype):
    hw = hh * ww

    def kernel(x_ref, w_ref, b_ref, g_ref, be_ref, gm_ref, *rest):
        if res_mode == "shortcut":
            res_ref, wsc_ref, bsc_ref, o_ref = rest
        elif res_mode == "add":
            res_ref, o_ref = rest
        else:
            (o_ref,) = rest

        # ---- in-VMEM im2col: 9 shifted views of the zero-padded block -------
        xp = x_ref[0]                                    # (H+2, W+2, Cin)
        taps = [xp[ky:ky + hh, kx:kx + ww, :]
                for ky in range(3) for kx in range(3)]   # 9 x (H, W, Cin)
        col = jnp.concatenate(taps, axis=-1)             # (H, W, 9*Cin)
        col = col.reshape(hw, col.shape[-1])             # (HW, 9*Cin)

        wmat = w_ref[...]
        if matmul_dtype is not None:
            col = col.astype(matmul_dtype)
            wmat = wmat.astype(matmul_dtype)

        # ---- single matmul, K = 9*Cin, f32 accumulation ----------------------
        y = jnp.dot(col, wmat, preferred_element_type=jnp.float32)
        y = y + b_ref[...].astype(jnp.float32)           # (HW, Cout)

        # ---- vectorized GroupNorm (no per-group loop, no narrow stores) -----
        if use_norm:
            # gm_ref is the (Cout, Cout) group-mixing matrix pre-scaled by
            # 1/(HW*Cpg): mixing then reducing over HW gives each channel its
            # group's mean / variance.
            gm = gm_ref[...]
            mu = jnp.sum(jnp.dot(y, gm, preferred_element_type=jnp.float32),
                         axis=0, keepdims=True)          # (1, Cout)
            d = y - mu
            var = jnp.sum(jnp.dot(d * d, gm, preferred_element_type=jnp.float32),
                          axis=0, keepdims=True)         # (1, Cout)
            y = d * jax.lax.rsqrt(var + eps)
            y = y * g_ref[...].astype(jnp.float32) + be_ref[...].astype(jnp.float32)

        y = _gelu_exact(y)

        # ---- fused residual epilogue (f32) -----------------------------------
        if res_mode == "shortcut":
            r = res_ref[0].astype(jnp.float32)           # (HW, Cin0)
            y = y + jnp.dot(r, wsc_ref[...], preferred_element_type=jnp.float32)
            y = y + bsc_ref[...].astype(jnp.float32)
        elif res_mode == "add":
            y = y + res_ref[0].astype(jnp.float32)

        o_ref[0] = y.astype(o_ref.dtype)                 # single full-tile store

    return kernel


def conv3x3_gn_gelu(x_nhwc, w9, bias, gamma, beta, num_groups, use_norm=True,
                    eps=1e-5, residual=None, matmul_dtype=None):
    """residual: None | ("add", h0) | ("shortcut", h0, w_1x1, b_1x1)."""
    b, h, w, c_in = x_nhwc.shape
    c_out = w9.shape[-1]
    hw = h * w
    assert w9.shape[0] == 9 * c_in
    if use_norm:
        assert c_out % num_groups == 0, "num_groups must divide out_channels"

    # glue (memory reorg only): zero padding of the activation (no 9x im2col!)
    xpad = jnp.pad(x_nhwc, ((0, 0), (1, 1), (1, 1), (0, 0)))

    # group-mixing matrix, pre-scaled by 1/(HW*Cpg)
    cpg = max(c_out // max(num_groups, 1), 1)
    gid = jnp.arange(c_out) // cpg
    gm = (gid[:, None] == gid[None, :]).astype(jnp.float32) / float(hw * cpg)

    args = [xpad, w9, bias.reshape(1, c_out), gamma.reshape(1, c_out),
            beta.reshape(1, c_out), gm]
    in_specs = [
        pl.BlockSpec((1, h + 2, w + 2, c_in), lambda i: (i, 0, 0, 0)),
        pl.BlockSpec((9 * c_in, c_out), lambda i: (0, 0)),
        pl.BlockSpec((1, c_out), lambda i: (0, 0)),
        pl.BlockSpec((1, c_out), lambda i: (0, 0)),
        pl.BlockSpec((1, c_out), lambda i: (0, 0)),
        pl.BlockSpec((c_out, c_out), lambda i: (0, 0)),
    ]

    res_mode = None
    if residual is not None:
        res_mode = residual[0]
        h0 = residual[1]
        c_res = h0.shape[-1]
        args.append(h0.reshape(b, hw, c_res))
        in_specs.append(pl.BlockSpec((1, hw, c_res), lambda i: (i, 0, 0)))
        if res_mode == "shortcut":
            wsc, bsc = residual[2], residual[3]
            args.append(wsc)
            args.append(bsc.reshape(1, c_out))
            in_specs.append(pl.BlockSpec((c_res, c_out), lambda i: (0, 0)))
            in_specs.append(pl.BlockSpec((1, c_out), lambda i: (0, 0)))

    kernel = _make_conv_kernel(h, w, use_norm, eps, res_mode, matmul_dtype)

    out = pl.pallas_call(
        kernel,
        out_shape=jax.ShapeDtypeStruct((b, hw, c_out), x_nhwc.dtype),
        grid=(b,),
        in_specs=in_specs,
        out_specs=pl.BlockSpec((1, hw, c_out), lambda i: (i, 0, 0)),
        compiler_params=pltpu.CompilerParams(
            dimension_semantics=("parallel",),
            vmem_limit_bytes=32 * 1024 * 1024),
    )(*args)
    return out.reshape(b, h, w, c_out)


# ----------------------------------------------------------------------------
# Down module: params + forward
# ----------------------------------------------------------------------------
def init_down_params(key, in_channels, out_channels, in0_channels, cfg):
    num_blocks = cfg["num_blocks"]
    keys = iter(jax.random.split(key, num_blocks * 4 + 2))
    blocks = []
    for block in range(num_blocks):
        if block == 0:
            in_c = in_channels + in0_channels * int(
                (not cfg["first"]) and cfg["disentangle"])
        else:
            in_c = out_channels
        w1 = 0.1 * jax.random.normal(next(keys), (out_channels, in_c, 3, 3),
                                     jnp.float32)
        b1 = 0.1 * jax.random.normal(next(keys), (out_channels,), jnp.float32)
        w2 = 0.1 * jax.random.normal(next(keys), (out_channels, out_channels, 3, 3),
                                     jnp.float32)
        b2 = 0.1 * jax.random.normal(next(keys), (out_channels,), jnp.float32)
        blocks.append(dict(
            w1=_w3x3_to_mat(w1), b1=b1,
            g1=jnp.ones((out_channels,), jnp.float32),
            be1=jnp.zeros((out_channels,), jnp.float32),
            w2=_w3x3_to_mat(w2), b2=b2,
            g2=jnp.ones((out_channels,), jnp.float32),
            be2=jnp.zeros((out_channels,), jnp.float32),
        ))
    params = {"blocks": blocks}
    if cfg["residual"]:
        ws = 0.1 * jax.random.normal(next(keys), (out_channels, in_channels, 1, 1),
                                     jnp.float32)
        bs = 0.1 * jax.random.normal(next(keys), (out_channels,), jnp.float32)
        params["shortcut_w"] = jnp.transpose(ws[:, :, 0, 0], (1, 0))  # (Cin, Cout)
        params["shortcut_b"] = bs
    return params


def down_forward(params, dx_nchw, h_nchw, cfg, down=True):
    mm_dtype = cfg.get("matmul_dtype", None)   # e.g. jnp.bfloat16 on v6e/v7x
    # NCHW -> NHWC (glue)
    dx = jnp.transpose(dx_nchw, (0, 2, 3, 1))
    h = jnp.transpose(h_nchw, (0, 2, 3, 1))
    h0 = None
    if down:
        if cfg["disentangle"]:
            dx = pool2(dx, avg=cfg["avg"])
        h = pool2(h, avg=cfg["avg"])
        h0 = h
        if (not cfg["first"]) and cfg["disentangle"]:
            h = jnp.concatenate([h, dx], axis=-1)   # channel concat (glue)
    for block in range(cfg["num_blocks"]):
        bp = params["blocks"][block]
        # ConvBlock = 2 x (conv3x3 -> GroupNorm -> GELU); the residual of the
        # Down module is fused into the second conv's epilogue.
        h = conv3x3_gn_gelu(h, bp["w1"], bp["b1"], bp["g1"], bp["be1"],
                            cfg["num_groups"], cfg["norm"], matmul_dtype=mm_dtype)
        if cfg["residual"]:
            if block == 0:
                if h0 is None:
                    raise ValueError("residual path needs down=True (h0 unset)")
                res = ("shortcut", h0, params["shortcut_w"], params["shortcut_b"])
            else:
                res = ("add", h0)
        else:
            res = None
        h = conv3x3_gn_gelu(h, bp["w2"], bp["b2"], bp["g2"], bp["be2"],
                            cfg["num_groups"], cfg["norm"], residual=res,
                            matmul_dtype=mm_dtype)
        if cfg["residual"]:
            h0 = h
    # NHWC -> NCHW (glue)
    return jnp.transpose(dx, (0, 3, 1, 2)), jnp.transpose(h, (0, 3, 1, 2))


# ----------------------------------------------------------------------------
# demo
# ----------------------------------------------------------------------------
if __name__ == "__main__":
    B, H, W = 2, 16, 16
    in_channels, out_channels, in0_channels = 4, 8, 4
    cfg = dict(num_blocks=2, residual=True, avg=True, num_groups=1, norm=True,
               first=False, disentangle=True)

    key = jax.random.PRNGKey(0)
    k_dx, k_h, k_p = jax.random.split(key, 3)
    dx = jax.random.normal(k_dx, (B, in0_channels, H, W), jnp.float32)
    h = jax.random.normal(k_h, (B, in_channels, H, W), jnp.float32)
    params = init_down_params(k_p, in_channels, out_channels, in0_channels, cfg)

    dx_out, h_out = down_forward(params, dx, h, cfg, down=True)
    jax.block_until_ready((dx_out, h_out))

    assert dx_out.shape == (B, in0_channels, H // 2, W // 2), dx_out.shape
    assert h_out.shape == (B, out_channels, H // 2, W // 2), h_out.shape
    assert bool(jnp.all(jnp.isfinite(dx_out))) and bool(jnp.all(jnp.isfinite(h_out)))
    print("KERNEL_OK")
</pallas_src>

<mosaic_0001>
module attributes {stable_mosaic.version = 11 : i64} {
  func.func @_pool2_kernel_avg(%arg0: i32, %arg1: memref<1x8x2x8x8xf32, #tpu.memory_space<vmem>>, %arg2: memref<1x8x8x4xf32, #tpu.memory_space<vmem>>) attributes {dimension_semantics = [#tpu.dimension_semantics<parallel>], iteration_bounds = array<i64: 2>, scalar_prefetch = 0 : i64, scratch_operands = 0 : i64, tpu.core_type = #tpu.core_type<tc>, window_params = [{transform_indices = @transform_0, window_bounds = array<i64: 1, 8, 2, 8, 8>}, {transform_indices = @transform_1, window_bounds = array<i64: 1, 8, 8, 4>}]} {
    %c0 = arith.constant 0 : index
    %c0_0 = arith.constant 0 : index
    %c0_1 = arith.constant 0 : index
    %c0_2 = arith.constant 0 : index
    %c0_3 = arith.constant 0 : index
    %0 = vector.load %arg1[%c0, %c0_0, %c0_1, %c0_2, %c0_3] : memref<1x8x2x8x8xf32, #tpu.memory_space<vmem>>, vector<1x8x2x8x8xf32>
    %1 = vector.shape_cast %0 : vector<1x8x2x8x8xf32> to vector<8x2x8x8xf32>
    %2 = vector.extract_strided_slice %1 {offsets = [0, 0, 0, 0], sizes = [8, 1, 8, 8], strides = [1, 1, 1, 1]} : vector<8x2x8x8xf32> to vector<8x1x8x8xf32>
    %3 = vector.shape_cast %2 : vector<8x1x8x8xf32> to vector<8x8x8xf32>
    %4 = vector.extract_strided_slice %1 {offsets = [0, 1, 0, 0], sizes = [8, 1, 8, 8], strides = [1, 1, 1, 1]} : vector<8x2x8x8xf32> to vector<8x1x8x8xf32>
    %5 = vector.shape_cast %4 : vector<8x1x8x8xf32> to vector<8x8x8xf32>
    %6 = arith.addf %3, %5 : vector<8x8x8xf32>
    %7 = vector.extract_strided_slice %6 {offsets = [0, 0, 0], sizes = [8, 8, 4], strides = [1, 1, 1]} : vector<8x8x8xf32> to vector<8x8x4xf32>
    %8 = vector.extract_strided_slice %6 {offsets = [0, 0, 4], sizes = [8, 8, 4], strides = [1, 1, 1]} : vector<8x8x8xf32> to vector<8x8x4xf32>
    %9 = arith.addf %7, %8 : vector<8x8x4xf32>
    %cst = arith.constant 2.500000e-01 : f32
    %10 = vector.broadcast %cst : f32 to vector<8x8x4xf32>
    %11 = arith.mulf %9, %10 : vector<8x8x4xf32>
    %c0_4 = arith.constant 0 : index
    %c0_5 = arith.constant 0 : index
    %c0_6 = arith.constant 0 : index
    %c0_7 = arith.constant 0 : index
    %12 = vector.load %arg2[%c0_4, %c0_5, %c0_6, %c0_7] : memref<1x8x8x4xf32, #tpu.memory_space<vmem>>, vector<1x8x8x4xf32>
    %13 = vector.shape_cast %12 : vector<1x8x8x4xf32> to vector<8x8x4xf32>
    %14 = vector.shape_cast %11 : vector<8x8x4xf32> to vector<1x8x8x4xf32>
    tpu.vector_store %arg2[%c0_4, %c0_5, %c0_6, %c0_7], %14 {strides = array<i32>} : memref<1x8x8x4xf32, #tpu.memory_space<vmem>>, vector<1x8x8x4xf32>,
    return
  }
  func.func @transform_0(%arg0: i32) -> (i32, i32, i32, i32, i32) {
    %c0_i32 = arith.constant 0 : i32
    %c0_i32_0 = arith.constant 0 : i32
    %c0_i32_1 = arith.constant 0 : i32
    %c0_i32_2 = arith.constant 0 : i32
    %c0_i32_3 = arith.constant 0 : i32
    return %arg0, %c0_i32, %c0_i32_0, %c0_i32_1, %c0_i32_2 : i32, i32, i32, i32, i32
  }
  func.func @transform_1(%arg0: i32) -> (i32, i32, i32, i32) {
    %c0_i32 = arith.constant 0 : i32
    %c0_i32_0 = arith.constant 0 : i32
    %c0_i32_1 = arith.constant 0 : i32
    %c0_i32_2 = arith.constant 0 : i32
    return %arg0, %c0_i32, %c0_i32_0, %c0_i32_1 : i32, i32, i32, i32
  }
}

</mosaic_0001>

<bundles_post_ra>
// kernel: tpu_custom_call.1
= control target key start
LH: loop header
LB: loop body
LE: loop exit
PB: predicated region body
PF: predicated region fallthrough
CT: control target
= control target key end

     0   :  { %6 = vsyncpa [#allocation3], 0  ;;  %s537_s0 = inlined_call_operand.hbm [shape: f32[2,8,2,8,8], index: 0, kind: input, shape index: {}]   ;;  %s538_s1 = inlined_call_operand.vmem [shape: f32[2,8,8,4], index: 1, kind: output, shape index: {}]  }
   0x1   :  { %8 = vsyncpa [#allocation3 + $0x1], 0  ;;  %s421_s6 = smov 0   ;;  %s423_s7 = smov 0  }
   0x2   :  { %s425_s8 = smov 0   ;;  %s427_s9 = smov 0  }
   0x3 LB: > { %s440_s10 = sadd.s32 4294967295, %s405_s9   ;;  %s443_s11 = sadd.s32 1, %s405_s9   ;;  %s405_s9 = sphi %s427_s9, %s545_s9   ;;  %s401_s8 = sphi %s425_s8, %s544_s8   ;;  %s397_s7 = sphi %s423_s7, %s543_s7   ;;  %s393_s6 = sphi %s421_s6, %s542_s6  }
   0x4   : > { %s18_s12 = ssub.s32 %s405_s9, %s443_s11  ;;  %s21_s13 = sadd.s32 1, %s401_s8 }
   0x5   : > { %p19_p0 = scmp.eq.s32.totalorder %s18_s12, 0  ;;  %p28_p1 = scmp.ne.s32.totalorder %s401_s8, %s397_s7 }
   0x6   : > { %p29_p2 = scmp.eq.s32.totalorder %s405_s9, 0  ;;  %p34_p3 = scmp.ne.s32.totalorder %s397_s7, %s393_s6 }
   0x7   : > { %s453_s14 = scalar_select %p19_p0, %s401_s8, %s21_s13  }
   0x8   : > { %p30_p4 = por %p29_p2, %p28_p1  ;;  %p35_p5 = scmp.eq.s32.totalorder %s440_s10, 0 }
   0x9   : > { %p305_p6 = scmp.lt.s32.totalorder %s405_s9, 2  ;;  %s84_s16 = sand.u32 1, %s401_s8  }
   0xa   : > { %p457_p7 = por %p35_p5, %p34_p3  ;;  %s288_s17 = sshll.u32 %s84_s16, 7 }
   0xb   : > { %s297_s18 = sshll.u32 %s405_s9, 11  ;;  %s88_s22 = scalar_lea.vmem [#allocation2], %s288_s17 }
   0xc   : > { %s466_s21 = scalar_lea.hbm %s537_s0, %s297_s18  ;;  %s95_s23 = sshll.u32 %s88_s22, 4  ;;  %s468_s23 = int_to_ptr.vmem [resolvable:$true] %s95_s23 }
   0xd   : > { %p470_p8 = pnand %p305_p6, %p30_p4  ;;  %s475_s25 = scalar_lea.sflag [#allocation3], %s84_s16 }
   0xe   : > { %s341_s26 = scalar_lea.hbm %s466_s21, 2048  ;;  %s346_s29 = scalar_lea.hbm %s537_s0, 4096 }
   0xf   : > { %p342_p10 = scmp.ne.s32.totalorder %s466_s21, %s341_s26  ;;  %p343_p11 = pneg %p470_p8 }
  0x10   : > { %p347_p0 = scmp.lt.u32.totalorder %s466_s21, %s537_s0  ;;  %p348_p1 = scmp.lt.u32.totalorder %s346_s29, %s341_s26 }
  0x11   : > { %p344_p12 = pnand %p343_p11, %p342_p10  ;;  %p350_p3 = scmp.lt.u32.totalorder %s341_s26, %s466_s21 }
  0x12   : > { %p349_p2 = por %p348_p1, %p347_p0 }
  0x13   : > { %p345_p13 = pneg %p344_p12 }
  0x14   : > { %p351_p4 = por %p350_p3, %p349_p2 }
  0x16   : > { %p352_p5 = pnand %p351_p4, %p345_p13 }
  0x18   : > { %355 = shalt.err (!%p352_p5)
}
  0x19   : > { %s356_s3 = scalar_lea.vmem %s468_s23, 2048  ;;  %s407_s4 = smov [#allocation2]  }
  0x1a   : > { %p357_p6 = scmp.ne.s32.totalorder %s468_s23, %s356_s3  ;;  %s361_s5 = sshll.u32 %s407_s4, 4  ;;  %s362_s5 = int_to_ptr.vmem [resolvable:$false] %s361_s5 }
  0x1b   : > { %s363_s6 = scalar_lea.vmem %s362_s5, 4096  ;;  %p364_p9 = scmp.lt.s32.totalorder %s468_s23, %s362_s5 }
  0x1c   : > { %p359_p10 = pnand %p357_p6, %p343_p11  ;;  %p365_p0 = scmp.lt.s32.totalorder %s363_s6, %s356_s3 }
  0x1e   : > { %p360_p12 = pneg %p359_p10  ;;  %p366_p1 = por %p365_p0, %p364_p9 }
  0x20   : > { %p367_p2 = pnand %p366_p1, %p360_p12 }
  0x22   : > { %370 = shalt.err (!%p367_p2)
}
  0x23   : > { %s408_s12 = smov 128   ;;  %s409_s13 = smov 8  }
  0x24   : > { %304 = dma.hbm_to_vmem [thread:$0]  (!%p470_p8), %s466_s21, 2048, %s468_s23, %s475_s25, %s408_s12, %s408_s12, %s409_s13  }
  0x25   : > { %p103_p11 = scmp.lt.s32.totalorder %s405_s9, 3  ;;  %p541_p13 = scmp.ge.s32.totalorder %s405_s9, 1 }
  0x27   : > { %p104_p3 = pnand %p541_p13, %p103_p11 }
  0x28   : > { %s109_s16 = sand.u32 (!%p104_p3), 1, %s397_s7  }
  0x29   : > { %107 = sbr.rel (%p104_p3) target bundleno = 185 (0xb9), region = 24  ;;  %s292_s17 = sshll.u32 (!%p104_p3), %s109_s16, 7 }
  0x2a   : > { %s110_s18 = scalar_lea.sflag (!%p104_p3), [#allocation3], %s109_s16  ;;  %s113_s19 = scalar_lea.vmem (!%p104_p3), [#allocation2], %s292_s17 }
  0x30   : > { %388 = dma.done.wait (%p457_p7), %s110_s18, 2048  }
  0x31   : > { %390 = vsyncadd (%p457_p7), %s110_s18, 4294965248  ;;  %v141_v0 = vld [vmem:[%s113_s19 + $0x20] sm:$0xff]  ;;  %v142_v1 = vld [vmem:[%s113_s19 + $0x28] sm:$0xff]  ;;  %s410_s9 = smov 124   ;;  %p132_p7 = scmp.lt.s32.totalorder %s440_s10, 1  ;;  %vm209_vm0 = vcmask 31744  }
  0x32   : > { %v137_v2 = vld [vmem:[%s113_s19] sm:$0xff]  ;;  %v155_v3 = vadd.f32 %v142_v1, %v141_v0  ;;  %v138_v4 = vld [vmem:[%s113_s19 + $0x8] sm:$0xff]  ;;  %v143_v5 = vld [vmem:[%s113_s19 + $0x30] sm:$0xff] }
  0x33   : > { %v144_v6 = vld [vmem:[%s113_s19 + $0x38] sm:$0xff]  ;;  %v153_v7 = vadd.f32 %v138_v4, %v137_v2  ;;  %v139_v8 = vld [vmem:[%s113_s19 + $0x10] sm:$0xff]  ;;  %v145_v14 = vld [vmem:[%s113_s19 + $0x40] sm:$0xff]  ;;  %s547_s10 = smov (!%p132_p7, %s440_s10), 1 }
  0x34   : > { %v140_v9 = vld [vmem:[%s113_s19 + $0x18] sm:$0xff]  ;;  %173 = vrot.lane.b32.xlu1 %v155_v3, %s410_s9  ;;  %v156_v10 = vadd.f32 %v144_v6, %v143_v5  ;;  %v147_v12 = vld [vmem:[%s113_s19 + $0x50] sm:$0xff]  ;;  %v146_v15 = vld [vmem:[%s113_s19 + $0x48] sm:$0xff]  ;;  %s298_s15 = sshll.u32 %s547_s10, 6 }
  0x35   : > { %169 = vrot.lane.b32.xlu0 %v153_v7, %s410_s9  ;;  %v154_v11 = vadd.f32 %v140_v9, %v139_v8  ;;  %v148_v13 = vld [vmem:[%s113_s19 + $0x58] sm:$0xff]  ;;  %v157_v17 = vadd.f32 %v146_v15, %v145_v14  ;;  %v151_v18 = vld [vmem:[%s113_s19 + $0x70] sm:$0xff]  ;;  %v149_v20 = vld [vmem:[%s113_s19 + $0x60] sm:$0xff]  ;;  %s136_s22 = scalar_lea.vmem %s538_s1, %s298_s15 }
  0x36   : > { %v158_v16 = vadd.f32 %v148_v13, %v147_v12  ;;  %v152_v19 = vld [vmem:[%s113_s19 + $0x78] sm:$0xff]  ;;  %v150_v21 = vld [vmem:[%s113_s19 + $0x68] sm:$0xff] }
  0x37   : > { %v160_v22 = vadd.f32 %v152_v19, %v151_v18  ;;  %v159_v23 = vadd.f32 %v150_v21, %v149_v20 }
  0x38   : > { %175 = vrot.lane.b32.xlu1 %v156_v10, %s410_s9 }
  0x39   : > { %171 = vrot.lane.b32.xlu0 %v154_v11, %s410_s9 }
  0x3c   : > { %179 = vrot.lane.b32.xlu1 %v158_v16, %s410_s9 }
  0x3d   : > { %177 = vrot.lane.b32.xlu0 %v157_v17, %s410_s9 }
  0x40   : > { %183 = vrot.lane.b32.xlu1 %v160_v22, %s410_s9 }
  0x41   : > { %181 = vrot.lane.b32.xlu0 %v159_v23, %s410_s9 }
  0xa6   : > { %v174_v24 = vpop.permute.xlu1 %173 }
  0xa7   : > { %v195_v25 = vadd.f32 %v174_v24, %v155_v3  ;;  %v170_v26 = vpop.permute.xlu0 %169 }
  0xa8   : > { %v193_v27 = vadd.f32 %v170_v26, %v153_v7 }
  0xa9   : > { %v203_v28 = vmul.f32 0.25, %v195_v25 }
  0xaa   : > { %v201_v29 = vmul.f32 0.25, %v193_v27  ;;  %v176_v30 = vpop.permute.xlu1 %175 }
  0xab   : > { %212 = vst.msk [vmem:[%s136_s22 + $0x10] sm:$0xff] %vm209_vm0, %v203_v28  ;;  %v196_v31 = vadd.f32 %v176_v30, %v156_v10  ;;  %v172_v32 = vpop.permute.xlu0 %171 }
  0xac   : > { %210 = vst.msk [vmem:[%s136_s22] sm:$0xff] %vm209_vm0, %v201_v29  ;;  %v194_v33 = vadd.f32 %v172_v32, %v154_v11 }
  0xad   : > { %v204_v34 = vmul.f32 0.25, %v196_v31 }
  0xae   : > { %v202_v35 = vmul.f32 0.25, %v194_v33  ;;  %v180_v36 = vpop.permute.xlu1 %179 }
  0xaf   : > { %213 = vst.msk [vmem:[%s136_s22 + $0x18] sm:$0xff] %vm209_vm0, %v204_v34  ;;  %v198_v37 = vadd.f32 %v180_v36, %v158_v16  ;;  %v178_v38 = vpop.permute.xlu0 %177 }
  0xb0   : > { %211 = vst.msk [vmem:[%s136_s22 + $0x8] sm:$0xff] %vm209_vm0, %v202_v35  ;;  %v197_v39 = vadd.f32 %v178_v38, %v157_v17 }
  0xb1   : > { %v206_v40 = vmul.f32 0.25, %v198_v37 }
  0xb2   : > { %v205_v41 = vmul.f32 0.25, %v197_v39  ;;  %v184_v42 = vpop.permute.xlu1 %183 }
  0xb3   : > { %215 = vst.msk [vmem:[%s136_s22 + $0x28] sm:$0xff] %vm209_vm0, %v206_v40  ;;  %v200_v43 = vadd.f32 %v184_v42, %v160_v22  ;;  %v182_v44 = vpop.permute.xlu0 %181 }
  0xb4   : > { %214 = vst.msk [vmem:[%s136_s22 + $0x20] sm:$0xff] %vm209_vm0, %v205_v41  ;;  %v199_v45 = vadd.f32 %v182_v44, %v159_v23 }
  0xb5   : > { %v208_v46 = vmul.f32 0.25, %v200_v43 }
  0xb6   : > { %v207_v47 = vmul.f32 0.25, %v199_v45 }
  0xb7   : > { %217 = vst.msk [vmem:[%s136_s22 + $0x38] sm:$0xff] %vm209_vm0, %v208_v46 }
  0xb8   : > { %216 = vst.msk [vmem:[%s136_s22 + $0x30] sm:$0xff] %vm209_vm0, %v207_v47 }
  0xb9 PF: > { %p11_p8 = scmp.ge.s32.totalorder %s443_s11, 4   ;;  %s542_s6 = smov %s397_s7 }
  0xba   : > { %s543_s7 = smov %s401_s8  ;;  %s544_s8 = smov %s453_s14 }
  0xbb   : > { %s545_s9 = smov %s443_s11  ;;  %13 = sbr.rel (!%p11_p8) target bundleno = 3 (0x3), region = 64 }
  0xc2   :  { %239 = vsyncpa [#allocation3], 1 }
  0xc3   :  { %241 = vsyncpa [#allocation3 + $0x1], 1 }

</bundles_post_ra>
